<compile_context>
chip_gen: v6e
topology: v6e:2x2x1
jax: 0.10.0
libtpu: 0.0.40
codegen_flags: <defaults>
</compile_context>

<pallas_src>
import jax
import jax.numpy as jnp
from jax import lax
from jax.experimental import pallas as pl
from jax.experimental.pallas import tpu as pltpu


def _to_2tuple(x):
    return (x, x) if isinstance(x, int) else tuple(x)


# Cap on patch-rows per grid step (bounds the static unroll of the per-row
# loop in the kernel; realistic ViT grids have Hp <= 32 patch rows anyway).
_MAX_PATCH_ROWS_PER_STEP = 32


def _vmem_capacity_bytes():
    """Physical VMEM of the current chip; conservative 64 MiB fallback (v7x)."""
    try:
        cap = getattr(pltpu.get_tpu_info(), "vmem_capacity_bytes", None)
        if cap:
            return int(cap)
    except Exception:
        pass
    return 64 * 1024 * 1024


def _resident_spec(block_shape, index_map):
    """BlockSpec for a grid-invariant operand: single-buffered when supported,
    so the dead second pipeline buffer does not eat VMEM."""
    buffered = getattr(pl, "Buffered", None)
    if buffered is not None:
        try:
            return pl.BlockSpec(block_shape, index_map, pipeline_mode=buffered(1))
        except TypeError:
            pass
    return pl.BlockSpec(block_shape, index_map)


# ---------------------------------------------------------------------------
# Fused im2col + projection kernel.
#
#   x_ref : (1, th, P_h, Wp, K)  bf16   padded-NHWC patch rows, K = P_w * C
#   w_ref : (P_h, K, E)          bf16   conv weight, w_ref[ph, pw*C + c, e]
#   b_ref : (1, E)               f32    bias
#   o_ref : (1, th, Wp, E)              output patch rows
#
# For every patch row t the kernel accumulates P_h sub-GEMMs
#   acc(Wp, E) += x[t, ph](Wp, K) @ w[ph](K, E)       (f32 MXU accumulation)
# ---------------------------------------------------------------------------
def _patch_embed_kernel(x_ref, w_ref, b_ref, o_ref):
    _, th, P_h, _, _ = x_ref.shape
    bias = b_ref[...]                                    # (1, E) f32, loaded once
    for t in range(th):                                  # small static unroll
        acc = jnp.dot(x_ref[0, t, 0], w_ref[0],
                      preferred_element_type=jnp.float32)
        for ph in range(1, P_h):
            acc += jnp.dot(x_ref[0, t, ph], w_ref[ph],
                           preferred_element_type=jnp.float32)
        o_ref[0, t] = (acc + bias).astype(o_ref.dtype)


def _fused_patch_proj(xv, wk, bias2, *, out_dtype=jnp.float32):
    """xv: (B, Hp, P_h, Wp, K) bf16 (free view of the padded NHWC image),
    wk: (P_h, K, E) bf16, bias2: (1, E) f32  ->  (B, Hp, Wp, E) out_dtype."""
    B, Hp, P_h, Wp, K = xv.shape
    E = wk.shape[-1]
    out_bytes = jnp.dtype(out_dtype).itemsize

    # Per-chip budgets: 128 MiB chips (v5e/v6e) get larger tiles and a 64 MiB
    # scoped limit; 64 MiB chips (v7x) stay at 32 MiB and a smaller working set.
    vmem_cap = _vmem_capacity_bytes()
    big_vmem = vmem_cap >= 96 * 1024 * 1024
    ws_budget = (24 if big_vmem else 12) * 1024 * 1024
    vmem_limit = (64 if big_vmem else 32) * 1024 * 1024

    # Patch-rows per grid step: as many as fit the double-buffered working set.
    per_row = 2 * (P_h * Wp * K * 2) + 2 * (Wp * E * out_bytes)
    th = max(1, min(Hp, _MAX_PATCH_ROWS_PER_STEP, ws_budget // max(per_row, 1)))
    if B == 1:
        # Keep >= 2 grid steps so 2-TensorCore chips (v7x) can shard the grid.
        th = min(th, max(1, pl.cdiv(Hp, 2)))
    # No divisibility requirement: boundary block is GIGO with masked writeback.
    grid = (B, pl.cdiv(Hp, th))

    cost = pl.CostEstimate(
        flops=2 * B * Hp * Wp * P_h * K * E,
        transcendentals=0,
        bytes_accessed=(B * Hp * P_h * Wp * K * 2 + P_h * K * E * 2 + E * 4
                        + B * Hp * Wp * E * out_bytes))

    return pl.pallas_call(
        _patch_embed_kernel,
        out_shape=jax.ShapeDtypeStruct((B, Hp, Wp, E), out_dtype),
        grid=grid,
        in_specs=[
            pl.BlockSpec((1, th, P_h, Wp, K), lambda b, i: (b, i, 0, 0, 0)),
            _resident_spec((P_h, K, E), lambda b, i: (0, 0, 0)),
            _resident_spec((1, E), lambda b, i: (0, 0)),
        ],
        out_specs=pl.BlockSpec((1, th, Wp, E), lambda b, i: (b, i, 0, 0)),
        compiler_params=pltpu.CompilerParams(
            dimension_semantics=("parallel", "parallel"),
            vmem_limit_bytes=vmem_limit),
        cost_estimate=cost,
    )(xv, wk, bias2)


# ---------------------------------------------------------------------------
# PatchEmbed module (JAX glue around the fused Pallas kernel)
# ---------------------------------------------------------------------------
class PatchEmbed:
    """Image to Patch Embedding (matches the PyTorch module, ratio=1 path)."""

    def __init__(self, img_size=16, patch_size=4, in_chans=4, embed_dim=32,
                 ratio=1, out_dtype=jnp.float32, key=None):
        img_size = _to_2tuple(img_size)
        patch_size = _to_2tuple(patch_size)
        self.img_size = img_size
        self.patch_size = patch_size
        self.ratio = ratio
        # Metadata kept identical to the PyTorch module (it ignores padding).
        self.patch_shape = (int(img_size[0] // patch_size[0] * ratio),
                            int(img_size[1] // patch_size[1] * ratio))
        self.origin_patch_shape = (int(img_size[0] // patch_size[0]),
                                   int(img_size[1] // patch_size[1]))
        self.num_patches = (img_size[1] // patch_size[1]) * \
                           (img_size[0] // patch_size[0]) * ratio ** 2
        self.stride = patch_size[0] // ratio
        self.padding = 4 + 2 * (ratio // 2 - 1)
        self.in_chans = in_chans
        self.embed_dim = embed_dim
        self.out_dtype = out_dtype

        # Deterministic parameter init (Conv2d default: U(-1/sqrt(fan_in), +)).
        if key is None:
            key = jax.random.PRNGKey(42)
        kw, kb = jax.random.split(key)
        fan_in = in_chans * patch_size[0] * patch_size[1]
        bound = 1.0 / (fan_in ** 0.5)
        self.proj_weight = jax.random.uniform(
            kw, (embed_dim, in_chans, patch_size[0], patch_size[1]),
            jnp.float32, -bound, bound)
        self.proj_bias = jax.random.uniform(
            kb, (embed_dim,), jnp.float32, -bound, bound)

    def __call__(self, x):
        """x: (B, C, H, W) float32 (NCHW, like PyTorch)."""
        B, C, H, W = x.shape
        P_h, P_w = self.patch_size
        pad = self.padding
        stride = self.stride
        # TODO(synk): ratio != 1 (overlapping stride) conv path not implemented.
        assert stride == P_h == P_w, \
            "kernel implements the stride == kernel_size (ratio=1) path"

        Hp = (H + 2 * pad - P_h) // stride + 1
        Wp = (W + 2 * pad - P_w) // stride + 1

        # NCHW f32 -> padded NHWC bf16 in one fused XLA pass under jit (the only
        # materialized intermediate: there is no im2col matrix anymore).
        # lax.pad's (possibly negative) high padding pads/crops to exactly the
        # rows/cols a stride==kernel conv actually reads: Hp*P_h x Wp*P_w.
        xh = jnp.transpose(x, (0, 2, 3, 1)).astype(jnp.bfloat16)
        pad_cfg = ((0, 0, 0),
                   (pad, Hp * P_h - H - pad, 0),
                   (pad, Wp * P_w - W - pad, 0),
                   (0, 0, 0))
        xp = lax.pad(xh, jnp.array(0, xh.dtype), pad_cfg)   # (B, Hp*P_h, Wp*P_w, C)
        xv = xp.reshape(B, Hp, P_h, Wp, P_w * C)            # free row-major view

        # Conv weight (E, C, P_h, P_w) -> (P_h, P_w*C, E) bf16 so that column
        # k = pw*C + c of w[ph] matches the NHWC lane order of xv.
        wk = jnp.transpose(self.proj_weight, (2, 3, 1, 0)) \
                .reshape(P_h, P_w * C, self.embed_dim).astype(jnp.bfloat16)
        b2 = self.proj_bias.reshape(1, -1).astype(jnp.float32)

        out = _fused_patch_proj(xv, wk, b2, out_dtype=self.out_dtype)
        out = out.reshape(B, Hp * Wp, self.embed_dim)  # == flatten(2).transpose(1, 2)
        return out, (Hp, Wp)


# ---------------------------------------------------------------------------
if __name__ == "__main__":
    B, C, H, W = 2, 4, 16, 16
    x = jax.random.normal(jax.random.PRNGKey(0), (B, C, H, W), jnp.float32)

    pe = PatchEmbed(img_size=16, patch_size=4, in_chans=C, embed_dim=32,
                    ratio=1, key=jax.random.PRNGKey(7))

    fwd = jax.jit(pe.__call__)
    out, (Hp, Wp) = fwd(x)
    out = jax.block_until_ready(out)
    Hp, Wp = int(Hp), int(Wp)

    # Reference: same conv semantics (F.conv2d, NCHW/OIHW) on bf16-quantized
    # inputs/weights, since the kernel computes in bf16 with f32 accumulation.
    xq = x.astype(jnp.bfloat16).astype(jnp.float32)
    wq = pe.proj_weight.astype(jnp.bfloat16).astype(jnp.float32)
    ref = lax.conv_general_dilated(
        xq, wq,
        window_strides=(pe.stride, pe.stride),
        padding=[(pe.padding, pe.padding), (pe.padding, pe.padding)],
        dimension_numbers=("NCHW", "OIHW", "NCHW"),
        precision=lax.Precision.HIGHEST,
    ) + pe.proj_bias[None, :, None, None]
    ref = ref.reshape(B, pe.embed_dim, Hp * Wp).transpose(0, 2, 1)

    assert out.shape == (B, Hp * Wp, pe.embed_dim), out.shape
    max_err = float(jnp.max(jnp.abs(out - ref)))
    assert jnp.allclose(out, ref, atol=2e-3, rtol=2e-3), max_err
    print("KERNEL_OK")
</pallas_src>

<mosaic_0001>
module attributes {stable_mosaic.version = 11 : i64} {
  func.func @_patch_embed_kernel(%arg0: i32, %arg1: i32, %arg2: memref<1x5x4x5x16xbf16, #tpu.memory_space<vmem>>, %arg3: memref<4x16x32xbf16, #tpu.memory_space<vmem>>, %arg4: memref<1x32xf32, #tpu.memory_space<vmem>>, %arg5: memref<1x5x5x32xf32, #tpu.memory_space<vmem>>) attributes {dimension_semantics = [#tpu.dimension_semantics<parallel>, #tpu.dimension_semantics<parallel>], iteration_bounds = array<i64: 2, 1>, scalar_prefetch = 0 : i64, scratch_operands = 0 : i64, tpu.core_type = #tpu.core_type<tc>, window_params = [{transform_indices = @transform_0, window_bounds = array<i64: 1, 5, 4, 5, 16>}, {pipeline_mode = #tpu.pipeline_mode<synchronous>, transform_indices = @transform_1, window_bounds = array<i64: 4, 16, 32>}, {pipeline_mode = #tpu.pipeline_mode<synchronous>, transform_indices = @transform_2, window_bounds = array<i64: 1, 32>}, {transform_indices = @transform_3, window_bounds = array<i64: 1, 5, 5, 32>}]} {
    %c0 = arith.constant 0 : index
    %c0_0 = arith.constant 0 : index
    %0 = vector.load %arg4[%c0, %c0_0] : memref<1x32xf32, #tpu.memory_space<vmem>>, vector<1x32xf32>
    %c0_1 = arith.constant 0 : index
    %c0_2 = arith.constant 0 : index
    %c0_3 = arith.constant 0 : index
    %c0_4 = arith.constant 0 : index
    %c0_5 = arith.constant 0 : index
    %1 = vector.load %arg2[%c0_1, %c0_2, %c0_3, %c0_4, %c0_5] : memref<1x5x4x5x16xbf16, #tpu.memory_space<vmem>>, vector<1x1x1x5x16xbf16>
    %2 = vector.shape_cast %1 : vector<1x1x1x5x16xbf16> to vector<5x16xbf16>
    %c0_6 = arith.constant 0 : index
    %c0_7 = arith.constant 0 : index
    %c0_8 = arith.constant 0 : index
    %3 = vector.load %arg3[%c0_6, %c0_7, %c0_8] : memref<4x16x32xbf16, #tpu.memory_space<vmem>>, vector<1x16x32xbf16>
    %4 = vector.shape_cast %3 : vector<1x16x32xbf16> to vector<16x32xbf16>
    %cst = arith.constant dense<0.000000e+00> : vector<5x32xf32>
    %5 = tpu.matmul %2, %4, %cst {dimension_numbers = #tpu.dot_dimension_numbers<[1], [0], [0], [1], [0, 0, 1, 1], [], []>} : vector<5x16xbf16>, vector<16x32xbf16>, vector<5x32xf32> -> vector<5x32xf32>
    %c0_9 = arith.constant 0 : index
    %c0_10 = arith.constant 0 : index
    %c1 = arith.constant 1 : index
    %c0_11 = arith.constant 0 : index
    %c0_12 = arith.constant 0 : index
    %6 = vector.load %arg2[%c0_9, %c0_10, %c1, %c0_11, %c0_12] : memref<1x5x4x5x16xbf16, #tpu.memory_space<vmem>>, vector<1x1x1x5x16xbf16>
    %7 = vector.shape_cast %6 : vector<1x1x1x5x16xbf16> to vector<5x16xbf16>
    %c1_13 = arith.constant 1 : index
    %c0_14 = arith.constant 0 : index
    %c0_15 = arith.constant 0 : index
    %8 = vector.load %arg3[%c1_13, %c0_14, %c0_15] : memref<4x16x32xbf16, #tpu.memory_space<vmem>>, vector<1x16x32xbf16>
    %9 = vector.shape_cast %8 : vector<1x16x32xbf16> to vector<16x32xbf16>
    %cst_16 = arith.constant dense<0.000000e+00> : vector<5x32xf32>
    %10 = tpu.matmul %7, %9, %cst_16 {dimension_numbers = #tpu.dot_dimension_numbers<[1], [0], [0], [1], [0, 0, 1, 1], [], []>} : vector<5x16xbf16>, vector<16x32xbf16>, vector<5x32xf32> -> vector<5x32xf32>
    %11 = arith.addf %5, %10 : vector<5x32xf32>
    %c0_17 = arith.constant 0 : index
    %c0_18 = arith.constant 0 : index
    %c2 = arith.constant 2 : index
    %c0_19 = arith.constant 0 : index
    %c0_20 = arith.constant 0 : index
    %12 = vector.load %arg2[%c0_17, %c0_18, %c2, %c0_19, %c0_20] : memref<1x5x4x5x16xbf16, #tpu.memory_space<vmem>>, vector<1x1x1x5x16xbf16>
    %13 = vector.shape_cast %12 : vector<1x1x1x5x16xbf16> to vector<5x16xbf16>
    %c2_21 = arith.constant 2 : index
    %c0_22 = arith.constant 0 : index
    %c0_23 = arith.constant 0 : index
    %14 = vector.load %arg3[%c2_21, %c0_22, %c0_23] : memref<4x16x32xbf16, #tpu.memory_space<vmem>>, vector<1x16x32xbf16>
    %15 = vector.shape_cast %14 : vector<1x16x32xbf16> to vector<16x32xbf16>
    %cst_24 = arith.constant dense<0.000000e+00> : vector<5x32xf32>
    %16 = tpu.matmul %13, %15, %cst_24 {dimension_numbers = #tpu.dot_dimension_numbers<[1], [0], [0], [1], [0, 0, 1, 1], [], []>} : vector<5x16xbf16>, vector<16x32xbf16>, vector<5x32xf32> -> vector<5x32xf32>
    %17 = arith.addf %11, %16 : vector<5x32xf32>
    %c0_25 = arith.constant 0 : index
    %c0_26 = arith.constant 0 : index
    %c3 = arith.constant 3 : index
    %c0_27 = arith.constant 0 : index
    %c0_28 = arith.constant 0 : index
    %18 = vector.load %arg2[%c0_25, %c0_26, %c3, %c0_27, %c0_28] : memref<1x5x4x5x16xbf16, #tpu.memory_space<vmem>>, vector<1x1x1x5x16xbf16>
    %19 = vector.shape_cast %18 : vector<1x1x1x5x16xbf16> to vector<5x16xbf16>
    %c3_29 = arith.constant 3 : index
    %c0_30 = arith.constant 0 : index
    %c0_31 = arith.constant 0 : index
    %20 = vector.load %arg3[%c3_29, %c0_30, %c0_31] : memref<4x16x32xbf16, #tpu.memory_space<vmem>>, vector<1x16x32xbf16>
    %21 = vector.shape_cast %20 : vector<1x16x32xbf16> to vector<16x32xbf16>
    %cst_32 = arith.constant dense<0.000000e+00> : vector<5x32xf32>
    %22 = tpu.matmul %19, %21, %cst_32 {dimension_numbers = #tpu.dot_dimension_numbers<[1], [0], [0], [1], [0, 0, 1, 1], [], []>} : vector<5x16xbf16>, vector<16x32xbf16>, vector<5x32xf32> -> vector<5x32xf32>
    %23 = arith.addf %17, %22 : vector<5x32xf32>
    %24 = vector.broadcast %0 : vector<1x32xf32> to vector<5x32xf32>
    %25 = arith.addf %23, %24 : vector<5x32xf32>
    %c0_33 = arith.constant 0 : index
    %c0_34 = arith.constant 0 : index
    %c0_35 = arith.constant 0 : index
    %c0_36 = arith.constant 0 : index
    %26 = vector.load %arg5[%c0_33, %c0_34, %c0_35, %c0_36] : memref<1x5x5x32xf32, #tpu.memory_space<vmem>>, vector<1x1x5x32xf32>
    %27 = vector.shape_cast %26 : vector<1x1x5x32xf32> to vector<5x32xf32>
    %28 = vector.shape_cast %25 : vector<5x32xf32> to vector<1x1x5x32xf32>
    tpu.vector_store %arg5[%c0_33, %c0_34, %c0_35, %c0_36], %28 {strides = array<i32>} : memref<1x5x5x32xf32, #tpu.memory_space<vmem>>, vector<1x1x5x32xf32>,
    %c0_37 = arith.constant 0 : index
    %c1_38 = arith.constant 1 : index
    %c0_39 = arith.constant 0 : index
    %c0_40 = arith.constant 0 : index
    %c0_41 = arith.constant 0 : index
    %29 = vector.load %arg2[%c0_37, %c1_38, %c0_39, %c0_40, %c0_41] : memref<1x5x4x5x16xbf16, #tpu.memory_space<vmem>>, vector<1x1x1x5x16xbf16>
    %30 = vector.shape_cast %29 : vector<1x1x1x5x16xbf16> to vector<5x16xbf16>
    %c0_42 = arith.constant 0 : index
    %c0_43 = arith.constant 0 : index
    %c0_44 = arith.constant 0 : index
    %31 = vector.load %arg3[%c0_42, %c0_43, %c0_44] : memref<4x16x32xbf16, #tpu.memory_space<vmem>>, vector<1x16x32xbf16>
    %32 = vector.shape_cast %31 : vector<1x16x32xbf16> to vector<16x32xbf16>
    %cst_45 = arith.constant dense<0.000000e+00> : vector<5x32xf32>
    %33 = tpu.matmul %30, %32, %cst_45 {dimension_numbers = #tpu.dot_dimension_numbers<[1], [0], [0], [1], [0, 0, 1, 1], [], []>} : vector<5x16xbf16>, vector<16x32xbf16>, vector<5x32xf32> -> vector<5x32xf32>
    %c0_46 = arith.constant 0 : index
    %c1_47 = arith.constant 1 : index
    %c1_48 = arith.constant 1 : index
    %c0_49 = arith.constant 0 : index
    %c0_50 = arith.constant 0 : index
    %34 = vector.load %arg2[%c0_46, %c1_47, %c1_48, %c0_49, %c0_50] : memref<1x5x4x5x16xbf16, #tpu.memory_space<vmem>>, vector<1x1x1x5x16xbf16>
    %35 = vector.shape_cast %34 : vector<1x1x1x5x16xbf16> to vector<5x16xbf16>
    %c1_51 = arith.constant 1 : index
    %c0_52 = arith.constant 0 : index
    %c0_53 = arith.constant 0 : index
    %36 = vector.load %arg3[%c1_51, %c0_52, %c0_53] : memref<4x16x32xbf16, #tpu.memory_space<vmem>>, vector<1x16x32xbf16>
    %37 = vector.shape_cast %36 : vector<1x16x32xbf16> to vector<16x32xbf16>
    %cst_54 = arith.constant dense<0.000000e+00> : vector<5x32xf32>
    %38 = tpu.matmul %35, %37, %cst_54 {dimension_numbers = #tpu.dot_dimension_numbers<[1], [0], [0], [1], [0, 0, 1, 1], [], []>} : vector<5x16xbf16>, vector<16x32xbf16>, vector<5x32xf32> -> vector<5x32xf32>
    %39 = arith.addf %33, %38 : vector<5x32xf32>
    %c0_55 = arith.constant 0 : index
    %c1_56 = arith.constant 1 : index
    %c2_57 = arith.constant 2 : index
    %c0_58 = arith.constant 0 : index
    %c0_59 = arith.constant 0 : index
    %40 = vector.load %arg2[%c0_55, %c1_56, %c2_57, %c0_58, %c0_59] : memref<1x5x4x5x16xbf16, #tpu.memory_space<vmem>>, vector<1x1x1x5x16xbf16>
    %41 = vector.shape_cast %40 : vector<1x1x1x5x16xbf16> to vector<5x16xbf16>
    %c2_60 = arith.constant 2 : index
    %c0_61 = arith.constant 0 : index
    %c0_62 = arith.constant 0 : index
    %42 = vector.load %arg3[%c2_60, %c0_61, %c0_62] : memref<4x16x32xbf16, #tpu.memory_space<vmem>>, vector<1x16x32xbf16>
    %43 = vector.shape_cast %42 : vector<1x16x32xbf16> to vector<16x32xbf16>
    %cst_63 = arith.constant dense<0.000000e+00> : vector<5x32xf32>
    %44 = tpu.matmul %41, %43, %cst_63 {dimension_numbers = #tpu.dot_dimension_numbers<[1], [0], [0], [1], [0, 0, 1, 1], [], []>} : vector<5x16xbf16>, vector<16x32xbf16>, vector<5x32xf32> -> vector<5x32xf32>
    %45 = arith.addf %39, %44 : vector<5x32xf32>
    %c0_64 = arith.constant 0 : index
    %c1_65 = arith.constant 1 : index
    %c3_66 = arith.constant 3 : index
    %c0_67 = arith.constant 0 : index
    %c0_68 = arith.constant 0 : index
    %46 = vector.load %arg2[%c0_64, %c1_65, %c3_66, %c0_67, %c0_68] : memref<1x5x4x5x16xbf16, #tpu.memory_space<vmem>>, vector<1x1x1x5x16xbf16>
    %47 = vector.shape_cast %46 : vector<1x1x1x5x16xbf16> to vector<5x16xbf16>
    %c3_69 = arith.constant 3 : index
    %c0_70 = arith.constant 0 : index
    %c0_71 = arith.constant 0 : index
    %48 = vector.load %arg3[%c3_69, %c0_70, %c0_71] : memref<4x16x32xbf16, #tpu.memory_space<vmem>>, vector<1x16x32xbf16>
    %49 = vector.shape_cast %48 : vector<1x16x32xbf16> to vector<16x32xbf16>
    %cst_72 = arith.constant dense<0.000000e+00> : vector<5x32xf32>
    %50 = tpu.matmul %47, %49, %cst_72 {dimension_numbers = #tpu.dot_dimension_numbers<[1], [0], [0], [1], [0, 0, 1, 1], [], []>} : vector<5x16xbf16>, vector<16x32xbf16>, vector<5x32xf32> -> vector<5x32xf32>
    %51 = arith.addf %45, %50 : vector<5x32xf32>
    %52 = vector.broadcast %0 : vector<1x32xf32> to vector<5x32xf32>
    %53 = arith.addf %51, %52 : vector<5x32xf32>
    %c0_73 = arith.constant 0 : index
    %c1_74 = arith.constant 1 : index
    %c0_75 = arith.constant 0 : index
    %c0_76 = arith.constant 0 : index
    %54 = vector.load %arg5[%c0_73, %c1_74, %c0_75, %c0_76] : memref<1x5x5x32xf32, #tpu.memory_space<vmem>>, vector<1x1x5x32xf32>
    %55 = vector.shape_cast %54 : vector<1x1x5x32xf32> to vector<5x32xf32>
    %56 = vector.shape_cast %53 : vector<5x32xf32> to vector<1x1x5x32xf32>
    tpu.vector_store %arg5[%c0_73, %c1_74, %c0_75, %c0_76], %56 {strides = array<i32>} : memref<1x5x5x32xf32, #tpu.memory_space<vmem>>, vector<1x1x5x32xf32>,
    %c0_77 = arith.constant 0 : index
    %c2_78 = arith.constant 2 : index
    %c0_79 = arith.constant 0 : index
    %c0_80 = arith.constant 0 : index
    %c0_81 = arith.constant 0 : index
    %57 = vector.load %arg2[%c0_77, %c2_78, %c0_79, %c0_80, %c0_81] : memref<1x5x4x5x16xbf16, #tpu.memory_space<vmem>>, vector<1x1x1x5x16xbf16>
    %58 = vector.shape_cast %57 : vector<1x1x1x5x16xbf16> to vector<5x16xbf16>
    %c0_82 = arith.constant 0 : index
    %c0_83 = arith.constant 0 : index
    %c0_84 = arith.constant 0 : index
    %59 = vector.load %arg3[%c0_82, %c0_83, %c0_84] : memref<4x16x32xbf16, #tpu.memory_space<vmem>>, vector<1x16x32xbf16>
    %60 = vector.shape_cast %59 : vector<1x16x32xbf16> to vector<16x32xbf16>
    %cst_85 = arith.constant dense<0.000000e+00> : vector<5x32xf32>
    %61 = tpu.matmul %58, %60, %cst_85 {dimension_numbers = #tpu.dot_dimension_numbers<[1], [0], [0], [1], [0, 0, 1, 1], [], []>} : vector<5x16xbf16>, vector<16x32xbf16>, vector<5x32xf32> -> vector<5x32xf32>
    %c0_86 = arith.constant 0 : index
    %c2_87 = arith.constant 2 : index
    %c1_88 = arith.constant 1 : index
    %c0_89 = arith.constant 0 : index
    %c0_90 = arith.constant 0 : index
    %62 = vector.load %arg2[%c0_86, %c2_87, %c1_88, %c0_89, %c0_90] : memref<1x5x4x5x16xbf16, #tpu.memory_space<vmem>>, vector<1x1x1x5x16xbf16>
    %63 = vector.shape_cast %62 : vector<1x1x1x5x16xbf16> to vector<5x16xbf16>
    %c1_91 = arith.constant 1 : index
    %c0_92 = arith.constant 0 : index
    %c0_93 = arith.constant 0 : index
    %64 = vector.load %arg3[%c1_91, %c0_92, %c0_93] : memref<4x16x32xbf16, #tpu.memory_space<vmem>>, vector<1x16x32xbf16>
    %65 = vector.shape_cast %64 : vector<1x16x32xbf16> to vector<16x32xbf16>
    %cst_94 = arith.constant dense<0.000000e+00> : vector<5x32xf32>
    %66 = tpu.matmul %63, %65, %cst_94 {dimension_numbers = #tpu.dot_dimension_numbers<[1], [0], [0], [1], [0, 0, 1, 1], [], []>} : vector<5x16xbf16>, vector<16x32xbf16>, vector<5x32xf32> -> vector<5x32xf32>
    %67 = arith.addf %61, %66 : vector<5x32xf32>
    %c0_95 = arith.constant 0 : index
    %c2_96 = arith.constant 2 : index
    %c2_97 = arith.constant 2 : index
    %c0_98 = arith.constant 0 : index
    %c0_99 = arith.constant 0 : index
    %68 = vector.load %arg2[%c0_95, %c2_96, %c2_97, %c0_98, %c0_99] : memref<1x5x4x5x16xbf16, #tpu.memory_space<vmem>>, vector<1x1x1x5x16xbf16>
    %69 = vector.shape_cast %68 : vector<1x1x1x5x16xbf16> to vector<5x16xbf16>
    %c2_100 = arith.constant 2 : index
    %c0_101 = arith.constant 0 : index
    %c0_102 = arith.constant 0 : index
    %70 = vector.load %arg3[%c2_100, %c0_101, %c0_102] : memref<4x16x32xbf16, #tpu.memory_space<vmem>>, vector<1x16x32xbf16>
    %71 = vector.shape_cast %70 : vector<1x16x32xbf16> to vector<16x32xbf16>
    %cst_103 = arith.constant dense<0.000000e+00> : vector<5x32xf32>
    %72 = tpu.matmul %69, %71, %cst_103 {dimension_numbers = #tpu.dot_dimension_numbers<[1], [0], [0], [1], [0, 0, 1, 1], [], []>} : vector<5x16xbf16>, vector<16x32xbf16>, vector<5x32xf32> -> vector<5x32xf32>
    %73 = arith.addf %67, %72 : vector<5x32xf32>
    %c0_104 = arith.constant 0 : index
    %c2_105 = arith.constant 2 : index
    %c3_106 = arith.constant 3 : index
    %c0_107 = arith.constant 0 : index
    %c0_108 = arith.constant 0 : index
    %74 = vector.load %arg2[%c0_104, %c2_105, %c3_106, %c0_107, %c0_108] : memref<1x5x4x5x16xbf16, #tpu.memory_space<vmem>>, vector<1x1x1x5x16xbf16>
    %75 = vector.shape_cast %74 : vector<1x1x1x5x16xbf16> to vector<5x16xbf16>
    %c3_109 = arith.constant 3 : index
    %c0_110 = arith.constant 0 : index
    %c0_111 = arith.constant 0 : index
    %76 = vector.load %arg3[%c3_109, %c0_110, %c0_111] : memref<4x16x32xbf16, #tpu.memory_space<vmem>>, vector<1x16x32xbf16>
    %77 = vector.shape_cast %76 : vector<1x16x32xbf16> to vector<16x32xbf16>
    %cst_112 = arith.constant dense<0.000000e+00> : vector<5x32xf32>
    %78 = tpu.matmul %75, %77, %cst_112 {dimension_numbers = #tpu.dot_dimension_numbers<[1], [0], [0], [1], [0, 0, 1, 1], [], []>} : vector<5x16xbf16>, vector<16x32xbf16>, vector<5x32xf32> -> vector<5x32xf32>
    %79 = arith.addf %73, %78 : vector<5x32xf32>
    %80 = vector.broadcast %0 : vector<1x32xf32> to vector<5x32xf32>
    %81 = arith.addf %79, %80 : vector<5x32xf32>
    %c0_113 = arith.constant 0 : index
    %c2_114 = arith.constant 2 : index
    %c0_115 = arith.constant 0 : index
    %c0_116 = arith.constant 0 : index
    %82 = vector.load %arg5[%c0_113, %c2_114, %c0_115, %c0_116] : memref<1x5x5x32xf32, #tpu.memory_space<vmem>>, vector<1x1x5x32xf32>
    %83 = vector.shape_cast %82 : vector<1x1x5x32xf32> to vector<5x32xf32>
    %84 = vector.shape_cast %81 : vector<5x32xf32> to vector<1x1x5x32xf32>
    tpu.vector_store %arg5[%c0_113, %c2_114, %c0_115, %c0_116], %84 {strides = array<i32>} : memref<1x5x5x32xf32, #tpu.memory_space<vmem>>, vector<1x1x5x32xf32>,
    %c0_117 = arith.constant 0 : index
    %c3_118 = arith.constant 3 : index
    %c0_119 = arith.constant 0 : index
    %c0_120 = arith.constant 0 : index
    %c0_121 = arith.constant 0 : index
    %85 = vector.load %arg2[%c0_117, %c3_118, %c0_119, %c0_120, %c0_121] : memref<1x5x4x5x16xbf16, #tpu.memory_space<vmem>>, vector<1x1x1x5x16xbf16>
    %86 = vector.shape_cast %85 : vector<1x1x1x5x16xbf16> to vector<5x16xbf16>
    %c0_122 = arith.constant 0 : index
    %c0_123 = arith.constant 0 : index
    %c0_124 = arith.constant 0 : index
    %87 = vector.load %arg3[%c0_122, %c0_123, %c0_124] : memref<4x16x32xbf16, #tpu.memory_space<vmem>>, vector<1x16x32xbf16>
    %88 = vector.shape_cast %87 : vector<1x16x32xbf16> to vector<16x32xbf16>
    %cst_125 = arith.constant dense<0.000000e+00> : vector<5x32xf32>
    %89 = tpu.matmul %86, %88, %cst_125 {dimension_numbers = #tpu.dot_dimension_numbers<[1], [0], [0], [1], [0, 0, 1, 1], [], []>} : vector<5x16xbf16>, vector<16x32xbf16>, vector<5x32xf32> -> vector<5x32xf32>
    %c0_126 = arith.constant 0 : index
    %c3_127 = arith.constant 3 : index
    %c1_128 = arith.constant 1 : index
    %c0_129 = arith.constant 0 : index
    %c0_130 = arith.constant 0 : index
    %90 = vector.load %arg2[%c0_126, %c3_127, %c1_128, %c0_129, %c0_130] : memref<1x5x4x5x16xbf16, #tpu.memory_space<vmem>>, vector<1x1x1x5x16xbf16>
    %91 = vector.shape_cast %90 : vector<1x1x1x5x16xbf16> to vector<5x16xbf16>
    %c1_131 = arith.constant 1 : index
    %c0_132 = arith.constant 0 : index
    %c0_133 = arith.constant 0 : index
    %92 = vector.load %arg3[%c1_131, %c0_132, %c0_133] : memref<4x16x32xbf16, #tpu.memory_space<vmem>>, vector<1x16x32xbf16>
    %93 = vector.shape_cast %92 : vector<1x16x32xbf16> to vector<16x32xbf16>
    %cst_134 = arith.constant dense<0.000000e+00> : vector<5x32xf32>
    %94 = tpu.matmul %91, %93, %cst_134 {dimension_numbers = #tpu.dot_dimension_numbers<[1], [0], [0], [1], [0, 0, 1, 1], [], []>} : vector<5x16xbf16>, vector<16x32xbf16>, vector<5x32xf32> -> vector<5x32xf32>
    %95 = arith.addf %89, %94 : vector<5x32xf32>
    %c0_135 = arith.constant 0 : index
    %c3_136 = arith.constant 3 : index
    %c2_137 = arith.constant 2 : index
    %c0_138 = arith.constant 0 : index
    %c0_139 = arith.constant 0 : index
    %96 = vector.load %arg2[%c0_135, %c3_136, %c2_137, %c0_138, %c0_139] : memref<1x5x4x5x16xbf16, #tpu.memory_space<vmem>>, vector<1x1x1x5x16xbf16>
    %97 = vector.shape_cast %96 : vector<1x1x1x5x16xbf16> to vector<5x16xbf16>
    %c2_140 = arith.constant 2 : index
    %c0_141 = arith.constant 0 : index
    %c0_142 = arith.constant 0 : index
    %98 = vector.load %arg3[%c2_140, %c0_141, %c0_142] : memref<4x16x32xbf16, #tpu.memory_space<vmem>>, vector<1x16x32xbf16>
    %99 = vector.shape_cast %98 : vector<1x16x32xbf16> to vector<16x32xbf16>
    %cst_143 = arith.constant dense<0.000000e+00> : vector<5x32xf32>
    %100 = tpu.matmul %97, %99, %cst_143 {dimension_numbers = #tpu.dot_dimension_numbers<[1], [0], [0], [1], [0, 0, 1, 1], [], []>} : vector<5x16xbf16>, vector<16x32xbf16>, vector<5x32xf32> -> vector<5x32xf32>
    %101 = arith.addf %95, %100 : vector<5x32xf32>
    %c0_144 = arith.constant 0 : index
    %c3_145 = arith.constant 3 : index
    %c3_146 = arith.constant 3 : index
    %c0_147 = arith.constant 0 : index
    %c0_148 = arith.constant 0 : index
    %102 = vector.load %arg2[%c0_144, %c3_145, %c3_146, %c0_147, %c0_148] : memref<1x5x4x5x16xbf16, #tpu.memory_space<vmem>>, vector<1x1x1x5x16xbf16>
    %103 = vector.shape_cast %102 : vector<1x1x1x5x16xbf16> to vector<5x16xbf16>
    %c3_149 = arith.constant 3 : index
    %c0_150 = arith.constant 0 : index
    %c0_151 = arith.constant 0 : index
    %104 = vector.load %arg3[%c3_149, %c0_150, %c0_151] : memref<4x16x32xbf16, #tpu.memory_space<vmem>>, vector<1x16x32xbf16>
    %105 = vector.shape_cast %104 : vector<1x16x32xbf16> to vector<16x32xbf16>
    %cst_152 = arith.constant dense<0.000000e+00> : vector<5x32xf32>
    %106 = tpu.matmul %103, %105, %cst_152 {dimension_numbers = #tpu.dot_dimension_numbers<[1], [0], [0], [1], [0, 0, 1, 1], [], []>} : vector<5x16xbf16>, vector<16x32xbf16>, vector<5x32xf32> -> vector<5x32xf32>
    %107 = arith.addf %101, %106 : vector<5x32xf32>
    %108 = vector.broadcast %0 : vector<1x32xf32> to vector<5x32xf32>
    %109 = arith.addf %107, %108 : vector<5x32xf32>
    %c0_153 = arith.constant 0 : index
    %c3_154 = arith.constant 3 : index
    %c0_155 = arith.constant 0 : index
    %c0_156 = arith.constant 0 : index
    %110 = vector.load %arg5[%c0_153, %c3_154, %c0_155, %c0_156] : memref<1x5x5x32xf32, #tpu.memory_space<vmem>>, vector<1x1x5x32xf32>
    %111 = vector.shape_cast %110 : vector<1x1x5x32xf32> to vector<5x32xf32>
    %112 = vector.shape_cast %109 : vector<5x32xf32> to vector<1x1x5x32xf32>
    tpu.vector_store %arg5[%c0_153, %c3_154, %c0_155, %c0_156], %112 {strides = array<i32>} : memref<1x5x5x32xf32, #tpu.memory_space<vmem>>, vector<1x1x5x32xf32>,
    %c0_157 = arith.constant 0 : index
    %c4 = arith.constant 4 : index
    %c0_158 = arith.constant 0 : index
    %c0_159 = arith.constant 0 : index
    %c0_160 = arith.constant 0 : index
    %113 = vector.load %arg2[%c0_157, %c4, %c0_158, %c0_159, %c0_160] : memref<1x5x4x5x16xbf16, #tpu.memory_space<vmem>>, vector<1x1x1x5x16xbf16>
    %114 = vector.shape_cast %113 : vector<1x1x1x5x16xbf16> to vector<5x16xbf16>
    %c0_161 = arith.constant 0 : index
    %c0_162 = arith.constant 0 : index
    %c0_163 = arith.constant 0 : index
    %115 = vector.load %arg3[%c0_161, %c0_162, %c0_163] : memref<4x16x32xbf16, #tpu.memory_space<vmem>>, vector<1x16x32xbf16>
    %116 = vector.shape_cast %115 : vector<1x16x32xbf16> to vector<16x32xbf16>
    %cst_164 = arith.constant dense<0.000000e+00> : vector<5x32xf32>
    %117 = tpu.matmul %114, %116, %cst_164 {dimension_numbers = #tpu.dot_dimension_numbers<[1], [0], [0], [1], [0, 0, 1, 1], [], []>} : vector<5x16xbf16>, vector<16x32xbf16>, vector<5x32xf32> -> vector<5x32xf32>
    %c0_165 = arith.constant 0 : index
    %c4_166 = arith.constant 4 : index
    %c1_167 = arith.constant 1 : index
    %c0_168 = arith.constant 0 : index
    %c0_169 = arith.constant 0 : index
    %118 = vector.load %arg2[%c0_165, %c4_166, %c1_167, %c0_168, %c0_169] : memref<1x5x4x5x16xbf16, #tpu.memory_space<vmem>>, vector<1x1x1x5x16xbf16>
    %119 = vector.shape_cast %118 : vector<1x1x1x5x16xbf16> to vector<5x16xbf16>
    %c1_170 = arith.constant 1 : index
    %c0_171 = arith.constant 0 : index
    %c0_172 = arith.constant 0 : index
    %120 = vector.load %arg3[%c1_170, %c0_171, %c0_172] : memref<4x16x32xbf16, #tpu.memory_space<vmem>>, vector<1x16x32xbf16>
    %121 = vector.shape_cast %120 : vector<1x16x32xbf16> to vector<16x32xbf16>
    %cst_173 = arith.constant dense<0.000000e+00> : vector<5x32xf32>
    %122 = tpu.matmul %119, %121, %cst_173 {dimension_numbers = #tpu.dot_dimension_numbers<[1], [0], [0], [1], [0, 0, 1, 1], [], []>} : vector<5x16xbf16>, vector<16x32xbf16>, vector<5x32xf32> -> vector<5x32xf32>
    %123 = arith.addf %117, %122 : vector<5x32xf32>
    %c0_174 = arith.constant 0 : index
    %c4_175 = arith.constant 4 : index
    %c2_176 = arith.constant 2 : index
    %c0_177 = arith.constant 0 : index
    %c0_178 = arith.constant 0 : index
    %124 = vector.load %arg2[%c0_174, %c4_175, %c2_176, %c0_177, %c0_178] : memref<1x5x4x5x16xbf16, #tpu.memory_space<vmem>>, vector<1x1x1x5x16xbf16>
    %125 = vector.shape_cast %124 : vector<1x1x1x5x16xbf16> to vector<5x16xbf16>
    %c2_179 = arith.constant 2 : index
    %c0_180 = arith.constant 0 : index
    %c0_181 = arith.constant 0 : index
    %126 = vector.load %arg3[%c2_179, %c0_180, %c0_181] : memref<4x16x32xbf16, #tpu.memory_space<vmem>>, vector<1x16x32xbf16>
    %127 = vector.shape_cast %126 : vector<1x16x32xbf16> to vector<16x32xbf16>
    %cst_182 = arith.constant dense<0.000000e+00> : vector<5x32xf32>
    %128 = tpu.matmul %125, %127, %cst_182 {dimension_numbers = #tpu.dot_dimension_numbers<[1], [0], [0], [1], [0, 0, 1, 1], [], []>} : vector<5x16xbf16>, vector<16x32xbf16>, vector<5x32xf32> -> vector<5x32xf32>
    %129 = arith.addf %123, %128 : vector<5x32xf32>
    %c0_183 = arith.constant 0 : index
    %c4_184 = arith.constant 4 : index
    %c3_185 = arith.constant 3 : index
    %c0_186 = arith.constant 0 : index
    %c0_187 = arith.constant 0 : index
    %130 = vector.load %arg2[%c0_183, %c4_184, %c3_185, %c0_186, %c0_187] : memref<1x5x4x5x16xbf16, #tpu.memory_space<vmem>>, vector<1x1x1x5x16xbf16>
    %131 = vector.shape_cast %130 : vector<1x1x1x5x16xbf16> to vector<5x16xbf16>
    %c3_188 = arith.constant 3 : index
    %c0_189 = arith.constant 0 : index
    %c0_190 = arith.constant 0 : index
    %132 = vector.load %arg3[%c3_188, %c0_189, %c0_190] : memref<4x16x32xbf16, #tpu.memory_space<vmem>>, vector<1x16x32xbf16>
    %133 = vector.shape_cast %132 : vector<1x16x32xbf16> to vector<16x32xbf16>
    %cst_191 = arith.constant dense<0.000000e+00> : vector<5x32xf32>
    %134 = tpu.matmul %131, %133, %cst_191 {dimension_numbers = #tpu.dot_dimension_numbers<[1], [0], [0], [1], [0, 0, 1, 1], [], []>} : vector<5x16xbf16>, vector<16x32xbf16>, vector<5x32xf32> -> vector<5x32xf32>
    %135 = arith.addf %129, %134 : vector<5x32xf32>
    %136 = vector.broadcast %0 : vector<1x32xf32> to vector<5x32xf32>
    %137 = arith.addf %135, %136 : vector<5x32xf32>
    %c0_192 = arith.constant 0 : index
    %c4_193 = arith.constant 4 : index
    %c0_194 = arith.constant 0 : index
    %c0_195 = arith.constant 0 : index
    %138 = vector.load %arg5[%c0_192, %c4_193, %c0_194, %c0_195] : memref<1x5x5x32xf32, #tpu.memory_space<vmem>>, vector<1x1x5x32xf32>
    %139 = vector.shape_cast %138 : vector<1x1x5x32xf32> to vector<5x32xf32>
    %140 = vector.shape_cast %137 : vector<5x32xf32> to vector<1x1x5x32xf32>
    tpu.vector_store %arg5[%c0_192, %c4_193, %c0_194, %c0_195], %140 {strides = array<i32>} : memref<1x5x5x32xf32, #tpu.memory_space<vmem>>, vector<1x1x5x32xf32>,
    return
  }
  func.func @transform_0(%arg0: i32, %arg1: i32) -> (i32, i32, i32, i32, i32) {
    %c0_i32 = arith.constant 0 : i32
    %c0_i32_0 = arith.constant 0 : i32
    %c0_i32_1 = arith.constant 0 : i32
    %c0_i32_2 = arith.constant 0 : i32
    return %arg0, %arg1, %c0_i32, %c0_i32_0, %c0_i32_1 : i32, i32, i32, i32, i32
  }
  func.func @transform_1(%arg0: i32, %arg1: i32) -> (i32, i32, i32) {
    %c0_i32 = arith.constant 0 : i32
    %c0_i32_0 = arith.constant 0 : i32
    %c0_i32_1 = arith.constant 0 : i32
    %c0_i32_2 = arith.constant 0 : i32
    return %c0_i32, %c0_i32_0, %c0_i32_1 : i32, i32, i32
  }
  func.func @transform_2(%arg0: i32, %arg1: i32) -> (i32, i32) {
    %c0_i32 = arith.constant 0 : i32
    %c0_i32_0 = arith.constant 0 : i32
    %c0_i32_1 = arith.constant 0 : i32
    return %c0_i32, %c0_i32_0 : i32, i32
  }
  func.func @transform_3(%arg0: i32, %arg1: i32) -> (i32, i32, i32, i32) {
    %c0_i32 = arith.constant 0 : i32
    %c0_i32_0 = arith.constant 0 : i32
    %c0_i32_1 = arith.constant 0 : i32
    return %arg0, %arg1, %c0_i32, %c0_i32_0 : i32, i32, i32, i32
  }
}

</mosaic_0001>

<bundles_post_ra>
// kernel: a_call__.1
= control target key start
LH: loop header
LB: loop body
LE: loop exit
PB: predicated region body
PF: predicated region fallthrough
CT: control target
= control target key end

     0   :  { %s1756_s12 = smov 0   ;;  %s1758_s13 = smov 0   ;;  %s1977_s0 = inlined_call_operand.vmem [shape: bf16[2,5,4,5,16], index: 0, kind: input, shape index: {}]   ;;  %s1978_s1 = inlined_call_operand.vmem [shape: bf16[4,16,32], index: 1, kind: input, shape index: {}]   ;;  %s1979_s2 = inlined_call_operand.vmem [shape: f32[1,32], index: 2, kind: input, shape index: {}]   ;;  %s1980_s3 = inlined_call_operand.vmem [shape: f32[2,5,5,32], index: 3, kind: output, shape index: {}]  }
   0x1   :  { %s1760_s14 = smov 0  }
   0x2 LB: > { %s25_s15 = sadd.s32 1, %s1728_s13  ;;  %p1403_p0 = scmp.ge.s32.totalorder %s1732_s14, 1  ;;  %s1732_s14 = sphi %s1760_s14, %s13_s14   ;;  %s1728_s13 = sphi %s1758_s13, %s1982_s13   ;;  %s1724_s12 = sphi %s1756_s12, %s1981_s12  }
   0x3   : > { %p27_p1 = scmp.ge.s32.totalorder %s25_s15, 2  ;;  %p159_p2 = scmp.lt.s32.totalorder %s1732_s14, 3 }
   0x5   : > { %s1984_s15 = smov (%p27_p1, %s25_s15), 0  ;;  %p160_p3 = pnand %p1403_p0, %p159_p2 }
   0x6   : > { %p193_p4 = scmp.lt.s32.totalorder (!%p160_p3), %s1724_s12, 1 }
   0x7   : > { %163 = sbr.rel (%p160_p3) target bundleno = 289 (0x121), region = 32 }
   0xc   : > { %v1690_v0 = vld [vmem:[%s1978_s1 + $0x8] sm:$0xff]   ;;  %v1734_v1 = vmov 0.0   ;;  %v1691_v2 = vld [vmem:[%s1978_s1] sm:$0xff]   ;;  %vm1735_vm0 = vmmov 0   ;;  %s1986_s12 = smov (!%p193_p4, %s1724_s12), 1  ;;  %v1692_v3 = vld [vmem:[%s1978_s1 + $0x10] sm:$0xff]  }
   0xd   : > { %1542 = vmatprep.subr.bf16.mxu0 %v1734_v1  ;;  %1548 = vmatprep.subr.bf16.mxu1 %v1734_v1  ;;  %s1662_s20 = smul.u32 80, %s1986_s12  ;;  %vm229_vm1 = vcmask 130048   ;;  %v1693_v4 = vld [vmem:[%s1978_s1 + $0x18] sm:$0xff]   ;;  %v1694_v7 = vld [vmem:[%s1978_s1 + $0x8] sm:$0xff]   ;;  %v1695_v8 = vld [vmem:[%s1978_s1] sm:$0xff]   ;;  %vm439_vm2 = vcmask 258048  }
   0xe   : > { %1543 = vmatpush3.bf16.msra.mxu0 %v1690_v0  ;;  %1544 = vmatprep.mubr.msk.bf16.mxu0 %vm1735_vm0, %v1734_v1  ;;  %v1696_v11 = vld [vmem:[%s1978_s1 + $0x10] sm:$0xff]   ;;  %v1697_v12 = vld [vmem:[%s1978_s1 + $0x18] sm:$0xff]   ;;  %v1698_v17 = vld [vmem:[%s1978_s1 + $0x8] sm:$0xff]   ;;  %s1663_s11 = smul.u32 40, %s1986_s12 }
   0xf   : > { %1549 = vmatpush3.bf16.msra.mxu1 %v1691_v2  ;;  %1550 = vmatprep.mubr.msk.bf16.mxu1 %vm1735_vm0, %v1734_v1  ;;  %s1800_s27 = scalar_lea.vmem %s1977_s0, %s1662_s20  ;;  %v1699_v18 = vld [vmem:[%s1978_s1] sm:$0xff]   ;;  %v1700_v21 = vld [vmem:[%s1978_s1 + $0x10] sm:$0xff]   ;;  %v1701_v22 = vld [vmem:[%s1978_s1 + $0x18] sm:$0xff]  }
  0x10   : > { %1554 = vmatprep.subr.bf16.mxu0 %v1734_v1  ;;  %1560 = vmatprep.subr.bf16.mxu1 %v1734_v1  ;;  %v1406_v5 = vld [vmem:[%s1800_s27 + $0x4] sm:$0x7]  ;;  %v215_v6 = vld [vmem:[%s1800_s27] sm:$0x7]  ;;  %v1413_v9 = vld [vmem:[%s1800_s27 + $0x8] sm:$0x7]  ;;  %s1951_s19 = scalar_lea.vmem %s1980_s3, %s1663_s11 }
  0x11   : > { %1545 = vmatmul.mubr.msk.bf16.vlgmr.msra.gmra.mxu0 %vm229_vm1, %v1406_v5  ;;  %v1418_v10 = vld [vmem:[%s1800_s27 + $0xc] sm:$0x7]  ;;  %v1425_v13 = vld [vmem:[%s1800_s27 + $0x14] sm:$0x7]  ;;  %v1424_v14 = vld [vmem:[%s1800_s27 + $0x10] sm:$0x7] }
  0x12   : > { %1551 = vmatmul.mubr.msk.bf16.vlgmr.msra.gmra.mxu1 %vm229_vm1, %v215_v6  ;;  %1555 = vmatpush3.bf16.msra.mxu0 %v1692_v3  ;;  %v1432_v15 = vld [vmem:[%s1800_s27 + $0x18] sm:$0x7]  ;;  %v1437_v16 = vld [vmem:[%s1800_s27 + $0x1c] sm:$0x7]  ;;  %v1444_v19 = vld [vmem:[%s1800_s27 + $0x24] sm:$0x7] }
  0x13   : > { %1561 = vmatpush3.bf16.msra.mxu1 %v1693_v4  ;;  %1556 = vmatprep.mubr.msk.bf16.mxu0 %vm1735_vm0, %v1734_v1  ;;  %v1443_v20 = vld [vmem:[%s1800_s27 + $0x20] sm:$0x7]  ;;  %v1451_v23 = vld [vmem:[%s1800_s27 + $0x28] sm:$0x7]  ;;  %v1456_v24 = vld [vmem:[%s1800_s27 + $0x2c] sm:$0x7] }
  0x14   : > { %1562 = vmatprep.mubr.msk.bf16.mxu1 %vm1735_vm0, %v1734_v1  ;;  %1566 = vmatprep.subr.bf16.mxu0 %v1734_v1  ;;  %v1702_v25 = vld [vmem:[%s1978_s1 + $0x8] sm:$0xff]   ;;  %v1703_v26 = vld [vmem:[%s1978_s1] sm:$0xff]   ;;  %v1463_v27 = vld [vmem:[%s1800_s27 + $0x34] sm:$0x7] }
  0x15   : > { %1572 = vmatprep.subr.bf16.mxu1 %v1734_v1  ;;  %v1462_v28 = vld [vmem:[%s1800_s27 + $0x30] sm:$0x7]  ;;  %v1705_v30 = vld [vmem:[%s1978_s1 + $0x18] sm:$0xff]   ;;  %v1706_v33 = vld [vmem:[%s1978_s1 + $0x8] sm:$0xff]  }
  0x16   : > { %v1704_v29 = vld [vmem:[%s1978_s1 + $0x10] sm:$0xff]   ;;  %v1470_v31 = vld [vmem:[%s1800_s27 + $0x38] sm:$0x7]  ;;  %v1475_v32 = vld [vmem:[%s1800_s27 + $0x3c] sm:$0x7] }
  0x17   : > { %v1707_v34 = vld [vmem:[%s1978_s1] sm:$0xff]   ;;  %v1708_v37 = vld [vmem:[%s1978_s1 + $0x10] sm:$0xff]   ;;  %v1709_v38 = vld [vmem:[%s1978_s1 + $0x18] sm:$0xff]  }
  0x18   : > { %v1482_v35 = vld [vmem:[%s1800_s27 + $0x44] sm:$0x7]  ;;  %v1481_v36 = vld [vmem:[%s1800_s27 + $0x40] sm:$0x7]  ;;  %v1489_v39 = vld [vmem:[%s1800_s27 + $0x48] sm:$0x7] }
  0x19   : > { %1557 = vmatmul.mubr.msk.bf16.vlgmr.msra.gmra.mxu0 %vm229_vm1, %v1413_v9  ;;  %v1494_v40 = vld [vmem:[%s1800_s27 + $0x4c] sm:$0x7]  ;;  %v1946_v53 = vld [vmem:[%s1979_s2] ss:$0 sm:$0xff] }
  0x1a   : > { %1563 = vmatmul.mubr.msk.bf16.vlgmr.msra.gmra.mxu1 %vm229_vm1, %v1418_v10  ;;  %1567 = vmatpush3.bf16.msra.mxu0 %v1694_v7 }
  0x1b   : > { %1573 = vmatpush3.bf16.msra.mxu1 %v1695_v8  ;;  %1568 = vmatprep.mubr.msk.bf16.mxu0 %vm1735_vm0, %v1734_v1 }
  0x1c   : > { %1574 = vmatprep.mubr.msk.bf16.mxu1 %vm1735_vm0, %v1734_v1  ;;  %1578 = vmatprep.subr.bf16.mxu0 %v1734_v1 }
  0x1d   : > { %1584 = vmatprep.subr.bf16.mxu1 %v1734_v1 }
  0x21   : > { %1569 = vmatmul.mubr.msk.bf16.vlgmr.msra.gmra.mxu0 %vm229_vm1, %v1425_v13 }
  0x22   : > { %1575 = vmatmul.mubr.msk.bf16.vlgmr.msra.gmra.mxu1 %vm229_vm1, %v1424_v14  ;;  %1579 = vmatpush3.bf16.msra.mxu0 %v1696_v11 }
  0x23   : > { %1585 = vmatpush3.bf16.msra.mxu1 %v1697_v12  ;;  %1580 = vmatprep.mubr.msk.bf16.mxu0 %vm1735_vm0, %v1734_v1 }
  0x24   : > { %1586 = vmatprep.mubr.msk.bf16.mxu1 %vm1735_vm0, %v1734_v1  ;;  %1590 = vmatprep.subr.bf16.mxu0 %v1734_v1 }
  0x25   : > { %1596 = vmatprep.subr.bf16.mxu1 %v1734_v1 }
  0x29   : > { %1581 = vmatmul.mubr.msk.bf16.vlgmr.msra.gmra.mxu0 %vm229_vm1, %v1432_v15 }
  0x2a   : > { %1587 = vmatmul.mubr.msk.bf16.vlgmr.msra.gmra.mxu1 %vm229_vm1, %v1437_v16  ;;  %1591 = vmatpush3.bf16.msra.mxu0 %v1698_v17 }
  0x2b   : > { %1597 = vmatpush3.bf16.msra.mxu1 %v1699_v18  ;;  %1592 = vmatprep.mubr.msk.bf16.mxu0 %vm1735_vm0, %v1734_v1 }
  0x2c   : > { %1598 = vmatprep.mubr.msk.bf16.mxu1 %vm1735_vm0, %v1734_v1  ;;  %1602 = vmatprep.subr.bf16.mxu0 %v1734_v1 }
  0x2d   : > { %1608 = vmatprep.subr.bf16.mxu1 %v1734_v1 }
  0x31   : > { %1593 = vmatmul.mubr.msk.bf16.vlgmr.msra.gmra.mxu0 %vm229_vm1, %v1444_v19 }
  0x32   : > { %1599 = vmatmul.mubr.msk.bf16.vlgmr.msra.gmra.mxu1 %vm229_vm1, %v1443_v20  ;;  %1603 = vmatpush3.bf16.msra.mxu0 %v1700_v21 }
  0x33   : > { %1609 = vmatpush3.bf16.msra.mxu1 %v1701_v22  ;;  %1604 = vmatprep.mubr.msk.bf16.mxu0 %vm1735_vm0, %v1734_v1 }
  0x34   : > { %1610 = vmatprep.mubr.msk.bf16.mxu1 %vm1735_vm0, %v1734_v1  ;;  %1614 = vmatprep.subr.bf16.mxu0 %v1734_v1 }
  0x35   : > { %1620 = vmatprep.subr.bf16.mxu1 %v1734_v1 }
  0x39   : > { %1605 = vmatmul.mubr.msk.bf16.vlgmr.msra.gmra.mxu0 %vm229_vm1, %v1451_v23 }
  0x3a   : > { %1611 = vmatmul.mubr.msk.bf16.vlgmr.msra.gmra.mxu1 %vm229_vm1, %v1456_v24  ;;  %1615 = vmatpush3.bf16.msra.mxu0 %v1702_v25 }
  0x3b   : > { %1621 = vmatpush3.bf16.msra.mxu1 %v1703_v26  ;;  %1616 = vmatprep.mubr.msk.bf16.mxu0 %vm1735_vm0, %v1734_v1 }
  0x3c   : > { %1622 = vmatprep.mubr.msk.bf16.mxu1 %vm1735_vm0, %v1734_v1  ;;  %1626 = vmatprep.subr.bf16.mxu0 %v1734_v1 }
  0x3d   : > { %1632 = vmatprep.subr.bf16.mxu1 %v1734_v1 }
  0x41   : > { %1617 = vmatmul.mubr.msk.bf16.vlgmr.msra.gmra.mxu0 %vm229_vm1, %v1463_v27 }
  0x42   : > { %1623 = vmatmul.mubr.msk.bf16.vlgmr.msra.gmra.mxu1 %vm229_vm1, %v1462_v28  ;;  %1627 = vmatpush3.bf16.msra.mxu0 %v1704_v29 }
  0x43   : > { %1633 = vmatpush3.bf16.msra.mxu1 %v1705_v30  ;;  %1628 = vmatprep.mubr.msk.bf16.mxu0 %vm1735_vm0, %v1734_v1 }
  0x44   : > { %1634 = vmatprep.mubr.msk.bf16.mxu1 %vm1735_vm0, %v1734_v1  ;;  %1638 = vmatprep.subr.bf16.mxu0 %v1734_v1 }
  0x45   : > { %1644 = vmatprep.subr.bf16.mxu1 %v1734_v1 }
  0x49   : > { %1629 = vmatmul.mubr.msk.bf16.vlgmr.msra.gmra.mxu0 %vm229_vm1, %v1470_v31 }
  0x4a   : > { %1635 = vmatmul.mubr.msk.bf16.vlgmr.msra.gmra.mxu1 %vm229_vm1, %v1475_v32  ;;  %1639 = vmatpush3.bf16.msra.mxu0 %v1706_v33 }
  0x4b   : > { %1645 = vmatpush3.bf16.msra.mxu1 %v1707_v34  ;;  %1640 = vmatprep.mubr.msk.bf16.mxu0 %vm1735_vm0, %v1734_v1 }
  0x4c   : > { %1646 = vmatprep.mubr.msk.bf16.mxu1 %vm1735_vm0, %v1734_v1  ;;  %1650 = vmatprep.subr.bf16.mxu0 %v1734_v1 }
  0x4d   : > { %1656 = vmatprep.subr.bf16.mxu1 %v1734_v1 }
  0x51   : > { %1641 = vmatmul.mubr.msk.bf16.vlgmr.msra.gmra.mxu0 %vm229_vm1, %v1482_v35 }
  0x52   : > { %1647 = vmatmul.mubr.msk.bf16.vlgmr.msra.gmra.mxu1 %vm229_vm1, %v1481_v36  ;;  %1651 = vmatpush3.bf16.msra.mxu0 %v1708_v37 }
  0x53   : > { %1657 = vmatpush3.bf16.msra.mxu1 %v1709_v38  ;;  %1652 = vmatprep.mubr.msk.bf16.mxu0 %vm1735_vm0, %v1734_v1 }
  0x54   : > { %1658 = vmatprep.mubr.msk.bf16.mxu1 %vm1735_vm0, %v1734_v1 }
  0x59   : > { %1653 = vmatmul.mubr.msk.bf16.vlgmr.msra.gmra.mxu0 %vm229_vm1, %v1489_v39 }
  0x5a   : > { %1659 = vmatmul.mubr.msk.bf16.vlgmr.msra.gmra.mxu1 %vm229_vm1, %v1494_v40 }
  0xd1   : > { %v267_v41 = vpop.f32.mrf.mxu0 }
  0xd2   : > { %v316_v42 = vpop.f32.mrf.mxu1 }
  0xd3   : > { %v1546_v43 = vpop.f32.mrf.mxu0  ;;  %v317_v49 = vadd.f32 %v316_v42, %v267_v41 }
  0xd4   : > { %v1552_v44 = vpop.f32.mrf.mxu1 }
  0xd5   : > { %v270_v45 = vpop.f32.mrf.mxu0 }
  0xd6   : > { %v319_v46 = vpop.f32.mrf.mxu1 }
  0xd7   : > { %v1547_v47 = vpop.f32.mrf.mxu0 }
  0xd8   : > { %v1553_v48 = vpop.f32.mrf.mxu1 }
  0xd9   : > { %v370_v50 = vpop.f32.mrf.mxu0 }
  0xda   : > { %v425_v51 = vpop.f32.mrf.mxu1  ;;  %v376_v52 = vadd.f32 %v370_v50, %v317_v49 }
  0xdb   : > { %v1558_v54 = vpop.f32.mrf.mxu0 }
  0xdc   : > { %v1564_v55 = vpop.f32.mrf.mxu1  ;;  %v431_v56 = vadd.f32 %v425_v51, %v376_v52 }
  0xdd   : > { %v373_v57 = vpop.f32.mrf.mxu0 }
  0xde   : > { %v428_v58 = vpop.f32.mrf.mxu1  ;;  %v438_v59 = vadd.f32 %v1946_v53, %v431_v56 }
  0xdf   : > { %v1559_v60 = vpop.f32.mrf.mxu0 }
  0xe0   : > { %v1565_v61 = vpop.f32.mrf.mxu1  ;;  %440 = vst.msk [vmem:[%s1951_s19] sm:$0x1f] %vm439_vm2, %v438_v59 }
  0xe1   : > { %v492_v62 = vpop.f32.mrf.mxu0 }
  0xe2   : > { %v541_v63 = vpop.f32.mrf.mxu1 }
  0xe3   : > { %v1570_v0 = vpop.f32.mrf.mxu0  ;;  %v542_v6 = vadd.f32 %v541_v63, %v492_v62 }
  0xe4   : > { %v1576_v1 = vpop.f32.mrf.mxu1 }
  0xe5   : > { %v495_v2 = vpop.f32.mrf.mxu0 }
  0xe6   : > { %v544_v3 = vpop.f32.mrf.mxu1 }
  0xe7   : > { %v1571_v4 = vpop.f32.mrf.mxu0 }
  0xe8   : > { %v1577_v5 = vpop.f32.mrf.mxu1 }
  0xe9   : > { %v594_v7 = vpop.f32.mrf.mxu0 }
  0xea   : > { %v648_v8 = vpop.f32.mrf.mxu1  ;;  %v600_v9 = vadd.f32 %v594_v7, %v542_v6 }
  0xeb   : > { %v1582_v10 = vpop.f32.mrf.mxu0 }
  0xec   : > { %v1588_v11 = vpop.f32.mrf.mxu1  ;;  %v654_v12 = vadd.f32 %v648_v8, %v600_v9 }
  0xed   : > { %v597_v13 = vpop.f32.mrf.mxu0 }
  0xee   : > { %v651_v14 = vpop.f32.mrf.mxu1  ;;  %v655_v15 = vadd.f32 %v1946_v53, %v654_v12 }
  0xef   : > { %v1583_v16 = vpop.f32.mrf.mxu0 }
  0xf0   : > { %v1589_v17 = vpop.f32.mrf.mxu1  ;;  %1442 = vst.msk [vmem:[%s1951_s19 + $0x8] sm:$0x1f] %vm439_vm2, %v655_v15 }
  0xf1   : > { %v709_v18 = vpop.f32.mrf.mxu0 }
  0xf2   : > { %v758_v19 = vpop.f32.mrf.mxu1 }
  0xf3   : > { %v1594_v20 = vpop.f32.mrf.mxu0  ;;  %v759_v26 = vadd.f32 %v758_v19, %v709_v18 }
  0xf4   : > { %v1600_v21 = vpop.f32.mrf.mxu1 }
  0xf5   : > { %v712_v22 = vpop.f32.mrf.mxu0 }
  0xf6   : > { %v761_v23 = vpop.f32.mrf.mxu1 }
  0xf7   : > { %v1595_v24 = vpop.f32.mrf.mxu0 }
  0xf8   : > { %v1601_v25 = vpop.f32.mrf.mxu1 }
  0xf9   : > { %v811_v27 = vpop.f32.mrf.mxu0 }
  0xfa   : > { %v865_v28 = vpop.f32.mrf.mxu1  ;;  %v817_v29 = vadd.f32 %v811_v27, %v759_v26 }
  0xfb   : > { %v1606_v30 = vpop.f32.mrf.mxu0 }
  0xfc   : > { %v1612_v31 = vpop.f32.mrf.mxu1  ;;  %v871_v32 = vadd.f32 %v865_v28, %v817_v29 }
  0xfd   : > { %v814_v33 = vpop.f32.mrf.mxu0 }
  0xfe   : > { %v868_v34 = vpop.f32.mrf.mxu1  ;;  %v872_v35 = vadd.f32 %v1946_v53, %v871_v32 }
  0xff   : > { %v1607_v36 = vpop.f32.mrf.mxu0 }
 0x100   : > { %v1613_v37 = vpop.f32.mrf.mxu1  ;;  %1461 = vst.msk [vmem:[%s1951_s19 + $0x10] sm:$0x1f] %vm439_vm2, %v872_v35 }
 0x101   : > { %v926_v38 = vpop.f32.mrf.mxu0 }
 0x102   : > { %v975_v39 = vpop.f32.mrf.mxu1 }
 0x103   : > { %v1618_v40 = vpop.f32.mrf.mxu0  ;;  %v976_v46 = vadd.f32 %v975_v39, %v926_v38 }
 0x104   : > { %v1624_v41 = vpop.f32.mrf.mxu1 }
 0x105   : > { %v929_v42 = vpop.f32.mrf.mxu0 }
 0x106   : > { %v978_v43 = vpop.f32.mrf.mxu1 }
 0x107   : > { %v1619_v44 = vpop.f32.mrf.mxu0 }
 0x108   : > { %v1625_v45 = vpop.f32.mrf.mxu1 }
 0x109   : > { %v1028_v47 = vpop.f32.mrf.mxu0 }
 0x10a   : > { %v1082_v48 = vpop.f32.mrf.mxu1  ;;  %v1034_v49 = vadd.f32 %v1028_v47, %v976_v46 }
 0x10b   : > { %v1630_v50 = vpop.f32.mrf.mxu0 }
 0x10c   : > { %v1636_v51 = vpop.f32.mrf.mxu1  ;;  %v1088_v52 = vadd.f32 %v1082_v48, %v1034_v49 }
 0x10d   : > { %v1031_v54 = vpop.f32.mrf.mxu0 }
 0x10e   : > { %v1085_v55 = vpop.f32.mrf.mxu1  ;;  %v1089_v56 = vadd.f32 %v1946_v53, %v1088_v52 }
 0x10f   : > { %v1631_v57 = vpop.f32.mrf.mxu0 }
 0x110   : > { %v1637_v58 = vpop.f32.mrf.mxu1  ;;  %1480 = vst.msk [vmem:[%s1951_s19 + $0x18] sm:$0x1f] %vm439_vm2, %v1089_v56 }
 0x111   : > { %v1143_v59 = vpop.f32.mrf.mxu0 }
 0x112   : > { %v1192_v60 = vpop.f32.mrf.mxu1 }
 0x113   : > { %v1642_v61 = vpop.f32.mrf.mxu0  ;;  %v1193_v3 = vadd.f32 %v1192_v60, %v1143_v59 }
 0x114   : > { %v1648_v62 = vpop.f32.mrf.mxu1 }
 0x115   : > { %v1146_v63 = vpop.f32.mrf.mxu0 }
 0x116   : > { %v1195_v0 = vpop.f32.mrf.mxu1 }
 0x117   : > { %v1643_v1 = vpop.f32.mrf.mxu0 }
 0x118   : > { %v1649_v2 = vpop.f32.mrf.mxu1 }
 0x119   : > { %v1245_v4 = vpop.f32.mrf.mxu0 }
 0x11a   : > { %v1299_v5 = vpop.f32.mrf.mxu1  ;;  %v1251_v6 = vadd.f32 %v1245_v4, %v1193_v3 }
 0x11b   : > { %v1654_v7 = vpop.f32.mrf.mxu0 }
 0x11c   : > { %v1660_v8 = vpop.f32.mrf.mxu1  ;;  %v1305_v9 = vadd.f32 %v1299_v5, %v1251_v6 }
 0x11d   : > { %v1248_v10 = vpop.f32.mrf.mxu0 }
 0x11e   : > { %v1302_v11 = vpop.f32.mrf.mxu1  ;;  %v1306_v12 = vadd.f32 %v1946_v53, %v1305_v9 }
 0x11f   : > { %v1655_v13 = vpop.f32.mrf.mxu0 }
 0x120   : > { %v1661_v14 = vpop.f32.mrf.mxu1  ;;  %1499 = vst.msk [vmem:[%s1951_s19 + $0x20] sm:$0x1f] %vm439_vm2, %v1306_v12 }
 0x121 PF: > { %s13_s14 = sadd.s32 1, %s1732_s14   ;;  %s1981_s12 = smov %s1728_s13 }
 0x122   : > { %p10_p5 = scmp.ge.s32.totalorder %s13_s14, 4   ;;  %s1982_s13 = smov %s1984_s15 }
 0x124   :  { %12 = sbr.rel (!%p10_p5) target bundleno = 2 (0x2), region = 88 }

</bundles_post_ra>
